<compile_context>
chip_gen: v6e
topology: v6e:2x2x1
jax: 0.10.0
libtpu: 0.0.40
codegen_flags: <defaults>
</compile_context>

<pallas_src>
import jax
import jax.numpy as jnp
from jax.experimental import pallas as pl
from jax.experimental.pallas import tpu as pltpu


def _round_up(x: int, m: int) -> int:
    return (x + m - 1) // m * m


def _pick_row_tile(rows: int, nfeat_pad: int) -> int:
    """Rows of the flattened (B*nfield) axis processed per grid step.

    Large (amortizes per-step pipeline overhead) but capped so the
    (row_tile, nfeat_pad) f32 one-hot intermediate stays within ~4 MiB.
    Always a multiple of 8 (sublane alignment).
    """
    onehot_budget = 4 << 20
    rt = max(8, min(2048, onehot_budget // (nfeat_pad * 4)))
    rt = (rt // 8) * 8
    rt = min(rt, _round_up(rows, 8))
    return max(rt, 8)


def _make_embedding_kernel(with_scale: bool):
    """Trace-time specialization: separate kernels for the v / no-v paths."""

    if with_scale:
        def kernel(idx_ref, v_ref, table_ref, out_ref):
            # idx_ref:   VMEM (R, 1)                 int32 row ids
            # v_ref:     VMEM (R, 1)                 f32 per-row scale
            # table_ref: VMEM (nfeat_pad, nemb_pad)  resident embedding table
            # out_ref:   VMEM (R, nemb_pad)
            rows = out_ref.shape[0]
            nfeat_pad = table_ref.shape[0]
            ids = idx_ref[...]                                        # (R, 1)
            col = jax.lax.broadcasted_iota(jnp.int32, (rows, nfeat_pad), 1)
            # One-hot with the scale fused in: row r has value v[r] at column
            # ids[r] and 0 elsewhere (exact for an f32 table).
            onehot = jnp.where(col == ids, v_ref[...], 0.0).astype(table_ref.dtype)
            out_ref[...] = jnp.dot(
                onehot, table_ref[...], preferred_element_type=jnp.float32
            ).astype(out_ref.dtype)
    else:
        def kernel(idx_ref, table_ref, out_ref):
            rows = out_ref.shape[0]
            nfeat_pad = table_ref.shape[0]
            ids = idx_ref[...]                                        # (R, 1)
            col = jax.lax.broadcasted_iota(jnp.int32, (rows, nfeat_pad), 1)
            onehot = (col == ids).astype(table_ref.dtype)
            out_ref[...] = jnp.dot(
                onehot, table_ref[...], preferred_element_type=jnp.float32
            ).astype(out_ref.dtype)

    return kernel


class PallasEmbedding:
    """Pallas TPU equivalent of the PyTorch `Embedding` module.

    forward(x, v) = table[x] * v[..., None]   (v optional)

    Notes:
      * Out-of-range ids (id >= nfeat) silently select zero-padded table rows
        (output zeros) instead of erroring like nn.Embedding.
      * Rows beyond B*nfield (padding up to a row_tile multiple) gather table
        row 0 and are sliced off in the wrapper.
    """

    def __init__(self, table):
        self.nfeat, self.nemb = table.shape
        self.dtype = table.dtype
        # Pad contraction dim (nfeat) for MXU alignment and the output lane
        # dim (nemb) to 128 for lane-dense, unmasked vector stores.  Done
        # ONCE here, not per forward call.
        self.nfeat_pad = _round_up(self.nfeat, 128)
        self.nemb_pad = _round_up(self.nemb, 128)
        self.table_p = (
            jnp.zeros((self.nfeat_pad, self.nemb_pad), table.dtype)
            .at[: self.nfeat, : self.nemb]
            .set(table)
        )

    def _pallas_fn(self, rows_pad, row_tile, with_scale, single_buffer_table):
        table_spec_kwargs = {}
        if single_buffer_table:
            # Constant index_map -> a second pipeline buffer is pure waste;
            # single-buffer the resident table (halves its VMEM footprint).
            table_spec_kwargs["pipeline_mode"] = pl.Buffered(1)
        table_spec = pl.BlockSpec(
            (self.nfeat_pad, self.nemb_pad), lambda i: (0, 0), **table_spec_kwargs
        )
        row_spec = pl.BlockSpec((row_tile, 1), lambda i: (i, 0))
        out_spec = pl.BlockSpec((row_tile, self.nemb_pad), lambda i: (i, 0))

        # Explicit VMEM budget: resident table (1 buffer) + one-hot/iota/mask
        # intermediates + double-buffered output + small id/scale tiles.
        table_bufs = 1 if single_buffer_table else 2
        table_bytes = table_bufs * self.nfeat_pad * self.nemb_pad * 4
        onehot_bytes = 3 * row_tile * self.nfeat_pad * 4
        out_bytes = 2 * row_tile * self.nemb_pad * 4
        small_io_bytes = 4 * row_tile * 128 * 4
        vmem_limit = table_bytes + onehot_bytes + out_bytes + small_io_bytes + (4 << 20)
        vmem_limit = int(min(max(vmem_limit, 32 << 20), 112 << 20))

        compiler_params = pltpu.CompilerParams(
            # Independent per-row-tile writes: lets v7x's two TensorCores
            # split the grid (each TC gets its own resident table copy, so the
            # VMEM budget above is per-TC).
            dimension_semantics=("parallel",),
            vmem_limit_bytes=vmem_limit,
        )

        in_specs = (
            [row_spec, row_spec, table_spec] if with_scale else [row_spec, table_spec]
        )
        return pl.pallas_call(
            _make_embedding_kernel(with_scale),
            out_shape=jax.ShapeDtypeStruct((rows_pad, self.nemb_pad), self.dtype),
            grid=(rows_pad // row_tile,),
            in_specs=in_specs,
            out_specs=out_spec,
            compiler_params=compiler_params,
        )

    def __call__(self, x, v=None, row_tile=None):
        B, nfield = x.shape
        rows = B * nfield

        if row_tile is None:
            row_tile = _pick_row_tile(rows, self.nfeat_pad)
        rows_pad = _round_up(rows, row_tile)

        idx = (
            jnp.zeros((rows_pad, 1), jnp.int32)
            .at[:rows, 0]
            .set(x.reshape(rows).astype(jnp.int32))
        )
        args = [idx]
        with_scale = v is not None
        if with_scale:
            v_p = (
                jnp.zeros((rows_pad, 1), self.dtype)
                .at[:rows, 0]
                .set(v.reshape(rows).astype(self.dtype))
            )
            args.append(v_p)
        args.append(self.table_p)

        try:
            out_flat = self._pallas_fn(rows_pad, row_tile, with_scale, True)(*args)
        except Exception:
            # pl.Buffered(1) not accepted by this jax/Mosaic version ->
            # fall back to default double buffering (identical results).
            out_flat = self._pallas_fn(rows_pad, row_tile, with_scale, False)(*args)

        return out_flat[:rows, : self.nemb].reshape(B, nfield, self.nemb)


if __name__ == "__main__":
    # Small shapes consistent with the module.
    nfeat, nemb = 40, 32
    B, nfield = 2, 8

    key = jax.random.PRNGKey(0)
    k_w, k_x, k_v = jax.random.split(key, 3)

    # nn.init.xavier_uniform_ on a (nfeat, nemb) weight: U(-b, b), b = sqrt(6/(nfeat+nemb))
    bound = (6.0 / (nfeat + nemb)) ** 0.5
    table = jax.random.uniform(k_w, (nfeat, nemb), jnp.float32, -bound, bound)

    x = jax.random.randint(k_x, (B, nfield), 0, nfeat, dtype=jnp.int32)
    v = jax.random.uniform(k_v, (B, nfield), dtype=jnp.float32)

    emb = PallasEmbedding(table)   # one-time padded table (hoisted out of forward)

    # With value tensor v
    out = jax.block_until_ready(emb(x, v))
    ref = table[x] * v[..., None]
    assert out.shape == (B, nfield, nemb)
    assert jnp.allclose(out, ref, atol=1e-5, rtol=1e-5), "mismatch vs reference (with v)"

    # Without v
    out2 = jax.block_until_ready(emb(x, None))
    assert jnp.allclose(out2, table[x], atol=1e-5, rtol=1e-5), "mismatch vs reference (no v)"

    print("KERNEL_OK")
</pallas_src>

<mosaic_0001>
module attributes {stable_mosaic.version = 11 : i64} {
  func.func @kernel(%arg0: i32, %arg1: memref<16x1xi32, #tpu.memory_space<vmem>>, %arg2: memref<16x1xf32, #tpu.memory_space<vmem>>, %arg3: memref<128x128xf32, #tpu.memory_space<vmem>>, %arg4: memref<16x128xf32, #tpu.memory_space<vmem>>) attributes {dimension_semantics = [#tpu.dimension_semantics<parallel>], iteration_bounds = array<i64: 1>, scalar_prefetch = 0 : i64, scratch_operands = 0 : i64, tpu.core_type = #tpu.core_type<tc>, window_params = [{transform_indices = @transform_0, window_bounds = array<i64: 16, 1>}, {transform_indices = @transform_1, window_bounds = array<i64: 16, 1>}, {pipeline_mode = #tpu.pipeline_mode<synchronous>, transform_indices = @transform_2, window_bounds = array<i64: 128, 128>}, {transform_indices = @transform_3, window_bounds = array<i64: 16, 128>}]} {
    %c0 = arith.constant 0 : index
    %c0_0 = arith.constant 0 : index
    %0 = vector.load %arg1[%c0, %c0_0] : memref<16x1xi32, #tpu.memory_space<vmem>>, vector<16x1xi32>
    %1 = tpu.iota {dimensions = array<i32: 1>} : vector<16x128xi32>
    %2 = vector.broadcast %0 : vector<16x1xi32> to vector<16x128xi32>
    %3 = arith.cmpi eq, %1, %2 : vector<16x128xi32>
    %c0_1 = arith.constant 0 : index
    %c0_2 = arith.constant 0 : index
    %4 = vector.load %arg2[%c0_1, %c0_2] : memref<16x1xf32, #tpu.memory_space<vmem>>, vector<16x1xf32>
    %cst = arith.constant 0.000000e+00 : f32
    %5 = vector.shape_cast %4 : vector<16x1xf32> to vector<16x1xf32>
    %6 = vector.broadcast %5 : vector<16x1xf32> to vector<16x128xf32>
    %7 = vector.broadcast %cst : f32 to vector<16x128xf32>
    %8 = arith.select %3, %6, %7 : vector<16x128xi1>, vector<16x128xf32>
    %c0_3 = arith.constant 0 : index
    %c0_4 = arith.constant 0 : index
    %9 = vector.load %arg3[%c0_3, %c0_4] : memref<128x128xf32, #tpu.memory_space<vmem>>, vector<128x128xf32>
    %cst_5 = arith.constant dense<0.000000e+00> : vector<16x128xf32>
    %10 = tpu.matmul %8, %9, %cst_5 {dimension_numbers = #tpu.dot_dimension_numbers<[1], [0], [0], [1], [0, 0, 1, 1], [], []>} : vector<16x128xf32>, vector<128x128xf32>, vector<16x128xf32> -> vector<16x128xf32>
    %c0_6 = arith.constant 0 : index
    %c0_7 = arith.constant 0 : index
    %11 = vector.load %arg4[%c0_6, %c0_7] : memref<16x128xf32, #tpu.memory_space<vmem>>, vector<16x128xf32>
    tpu.vector_store %arg4[%c0_6, %c0_7], %10 {strides = array<i32>} : memref<16x128xf32, #tpu.memory_space<vmem>>, vector<16x128xf32>,
    return
  }
  func.func @transform_0(%arg0: i32) -> (i32, i32) {
    %c0_i32 = arith.constant 0 : i32
    %c0_i32_0 = arith.constant 0 : i32
    return %arg0, %c0_i32 : i32, i32
  }
  func.func @transform_1(%arg0: i32) -> (i32, i32) {
    %c0_i32 = arith.constant 0 : i32
    %c0_i32_0 = arith.constant 0 : i32
    return %arg0, %c0_i32 : i32, i32
  }
  func.func @transform_2(%arg0: i32) -> (i32, i32) {
    %c0_i32 = arith.constant 0 : i32
    %c0_i32_0 = arith.constant 0 : i32
    %c0_i32_1 = arith.constant 0 : i32
    return %c0_i32, %c0_i32_0 : i32, i32
  }
  func.func @transform_3(%arg0: i32) -> (i32, i32) {
    %c0_i32 = arith.constant 0 : i32
    %c0_i32_0 = arith.constant 0 : i32
    return %arg0, %c0_i32 : i32, i32
  }
}

module attributes {stable_mosaic.version = 11 : i64} {
  func.func @kernel(%arg0: i32, %arg1: memref<16x1xi32, #tpu.memory_space<vmem>>, %arg2: memref<16x1xf32, #tpu.memory_space<vmem>>, %arg3: memref<128x128xf32, #tpu.memory_space<vmem>>, %arg4: memref<16x128xf32, #tpu.memory_space<vmem>>) attributes {dimension_semantics = [#tpu.dimension_semantics<parallel>], iteration_bounds = array<i64: 1>, scalar_prefetch = 0 : i64, scratch_operands = 0 : i64, tpu.core_type = #tpu.core_type<tc>, window_params = [{transform_indices = @transform_0, window_bounds = array<i64: 16, 1>}, {transform_indices = @transform_1, window_bounds = array<i64: 16, 1>}, {pipeline_mode = #tpu.pipeline_mode<synchronous>, transform_indices = @transform_2, window_bounds = array<i64: 128, 128>}, {transform_indices = @transform_3, window_bounds = array<i64: 16, 128>}]} {
    %c0 = arith.constant 0 : index
    %c0_0 = arith.constant 0 : index
    %0 = vector.load %arg1[%c0, %c0_0] : memref<16x1xi32, #tpu.memory_space<vmem>>, vector<16x1xi32>
    %1 = tpu.iota {dimensions = array<i32: 1>} : vector<16x128xi32>
    %2 = vector.broadcast %0 : vector<16x1xi32> to vector<16x128xi32>
    %3 = arith.cmpi eq, %1, %2 : vector<16x128xi32>
    %c0_1 = arith.constant 0 : index
    %c0_2 = arith.constant 0 : index
    %4 = vector.load %arg2[%c0_1, %c0_2] : memref<16x1xf32, #tpu.memory_space<vmem>>, vector<16x1xf32>
    %cst = arith.constant 0.000000e+00 : f32
    %5 = vector.shape_cast %4 : vector<16x1xf32> to vector<16x1xf32>
    %6 = vector.broadcast %5 : vector<16x1xf32> to vector<16x128xf32>
    %7 = vector.broadcast %cst : f32 to vector<16x128xf32>
    %8 = arith.select %3, %6, %7 : vector<16x128xi1>, vector<16x128xf32>
    %c0_3 = arith.constant 0 : index
    %c0_4 = arith.constant 0 : index
    %9 = vector.load %arg3[%c0_3, %c0_4] : memref<128x128xf32, #tpu.memory_space<vmem>>, vector<128x128xf32>
    %cst_5 = arith.constant dense<0.000000e+00> : vector<16x128xf32>
    %10 = tpu.matmul %8, %9, %cst_5 {dimension_numbers = #tpu.dot_dimension_numbers<[1], [0], [0], [1], [0, 0, 1, 1], [], []>} : vector<16x128xf32>, vector<128x128xf32>, vector<16x128xf32> -> vector<16x128xf32>
    %c0_6 = arith.constant 0 : index
    %c0_7 = arith.constant 0 : index
    %11 = vector.load %arg4[%c0_6, %c0_7] : memref<16x128xf32, #tpu.memory_space<vmem>>, vector<16x128xf32>
    tpu.vector_store %arg4[%c0_6, %c0_7], %10 {strides = array<i32>} : memref<16x128xf32, #tpu.memory_space<vmem>>, vector<16x128xf32>,
    return
  }
  func.func @transform_0(%arg0: i32) -> (i32, i32) {
    %c0_i32 = arith.constant 0 : i32
    %c0_i32_0 = arith.constant 0 : i32
    return %arg0, %c0_i32 : i32, i32
  }
  func.func @transform_1(%arg0: i32) -> (i32, i32) {
    %c0_i32 = arith.constant 0 : i32
    %c0_i32_0 = arith.constant 0 : i32
    return %arg0, %c0_i32 : i32, i32
  }
  func.func @transform_2(%arg0: i32) -> (i32, i32) {
    %c0_i32 = arith.constant 0 : i32
    %c0_i32_0 = arith.constant 0 : i32
    %c0_i32_1 = arith.constant 0 : i32
    return %c0_i32, %c0_i32_0 : i32, i32
  }
  func.func @transform_3(%arg0: i32) -> (i32, i32) {
    %c0_i32 = arith.constant 0 : i32
    %c0_i32_0 = arith.constant 0 : i32
    return %arg0, %c0_i32 : i32, i32
  }
}

</mosaic_0001>

<bundles_post_ra>
// kernel: tpu_custom_call.1
= control target key start
LH: loop header
LB: loop body
LE: loop exit
PB: predicated region body
PF: predicated region fallthrough
CT: control target
= control target key end

     0   :  { %8 = vsyncpa [#allocation3], 0  ;;  %s320_s0 = inlined_call_operand.vmem [shape: s32[16,1], index: 0, kind: input, shape index: {}]   ;;  %s321_s1 = inlined_call_operand.vmem [shape: f32[16,1], index: 1, kind: input, shape index: {}]   ;;  %s322_s2 = inlined_call_operand.hbm [shape: f32[128,128], index: 2, kind: input, shape index: {}]   ;;  %s323_s3 = inlined_call_operand.hbm [shape: f32[16,128], index: 3, kind: output, shape index: {}]  }
   0x1   :  { %9 = vsyncpa [#allocation4], 0  ;;  %s271_s12 = smov [#allocation2]  }
   0x2   :  { %s19_s13 = sshll.u32 %s271_s12, 4  ;;  %s20_s13 = int_to_ptr.vmem [resolvable:$true] %s19_s13 }
   0x3   :  { %s235_s14 = scalar_lea.vmem %s20_s13, 2048  ;;  %p240_p1 = scmp.lt.s32.totalorder %s20_s13, %s20_s13 }
   0x4   :  { %p236_p0 = scmp.ne.s32.totalorder %s20_s13, %s235_s14  ;;  %p241_p2 = scmp.lt.s32.totalorder %s235_s14, %s235_s14 }
   0x6   :  { %p242_p3 = por %p241_p2, %p240_p1 }
   0x8   :  { %p243_p4 = pnand %p242_p3, %p236_p0 }
   0xa   :  { %246 = shalt.err (!%p243_p4)
}
   0xb   :  { %s272_s15 = smov 128   ;;  %s273_s16 = smov 8  }
   0xc   :  { %25 = dma.hbm_to_vmem [thread:$0]  %s322_s2, 2048, %s20_s13, [#allocation3], %s272_s15, %s272_s15, %s273_s16  }
   0xd   :  { %267 = dma.done.wait [#allocation3], 2048  }
   0xe   :  { %268 = vsyncadd [#allocation3], 4294965248  ;;  %v274_v0 = vmov 0   ;;  %v41_v1 = vld [vmem:[%s321_s1] sm:$0xff]  ;;  %v70_v3 = vld [vmem:[#allocation2 + $0x78] sm:$0xff]  ;;  %v31_v21 = vlaneseq }
   0xf   :  { %226 = vset.pattern.permute.xlu1 %v274_v0  ;;  %225 = vset.pattern.permute.xlu0 %v274_v0  ;;  %v29_v2 = vld [vmem:[%s320_s0] sm:$0xff]  ;;  %v69_v4 = vld [vmem:[#allocation2 + $0x70] sm:$0xff]  ;;  %v42_v5 = vld [vmem:[%s321_s1 + $0x8] sm:$0xff] }
  0x10   :  { %45 = vperm.xlu1 %226, %v41_v1   ;;  %34 = vperm.xlu0 %225, %v29_v2   ;;  %v30_v6 = vld [vmem:[%s320_s0 + $0x8] sm:$0xff]  ;;  %v67_v8 = vld [vmem:[#allocation2 + $0x60] sm:$0xff]  ;;  %v66_v9 = vld [vmem:[#allocation2 + $0x58] sm:$0xff]  ;;  %v32_v22 = vand.u32 127, %v31_v21  ;;  %s275_s0 = smov [#allocation5]  }
  0x11   :  { %185 = vmatprep.subr.mxu0 %v70_v3  ;;  %v68_v7 = vld [vmem:[#allocation2 + $0x68] sm:$0xff]  ;;  %v65_v10 = vld [vmem:[#allocation2 + $0x50] sm:$0xff]  ;;  %v63_v12 = vld [vmem:[#allocation2 + $0x40] sm:$0xff]  ;;  %s153_s1 = sshll.u32 %s275_s0, 4  ;;  %s154_s1 = int_to_ptr.vmem [resolvable:$true] %s153_s1 }
  0x12   :  { %186 = vmatpush3.msra.mxu0 %v70_v3  ;;  %v64_v11 = vld [vmem:[#allocation2 + $0x48] sm:$0xff]  ;;  %v62_v13 = vld [vmem:[#allocation2 + $0x38] sm:$0xff]  ;;  %v61_v14 = vld [vmem:[#allocation2 + $0x30] sm:$0xff]  ;;  %s247_s26 = scalar_lea.vmem %s154_s1, 256  ;;  %p252_p6 = scmp.lt.s32.totalorder %s154_s1, %s154_s1 }
  0x13   :  { %187 = vmatprep.subr.mxu0 %v69_v4  ;;  %v60_v15 = vld [vmem:[#allocation2 + $0x28] sm:$0xff]  ;;  %v59_v16 = vld [vmem:[#allocation2 + $0x20] sm:$0xff]  ;;  %v58_v17 = vld [vmem:[#allocation2 + $0x18] sm:$0xff]  ;;  %p248_p5 = scmp.ne.s32.totalorder %s154_s1, %s247_s26  ;;  %p253_p7 = scmp.lt.s32.totalorder %s247_s26, %s247_s26 }
  0x14   :  { %50 = vperm.xlu1 %226, %v42_v5   ;;  %37 = vperm.xlu0 %225, %v30_v6   ;;  %v57_v18 = vld [vmem:[#allocation2 + $0x10] sm:$0xff]  ;;  %v56_v19 = vld [vmem:[#allocation2 + $0x8] sm:$0xff]  ;;  %v55_v20 = vld [vmem:[#allocation2] sm:$0xff] }
  0x15   :  { %188 = vmatpush3.msra.mxu0 %v69_v4  ;;  %p254_p8 = por %p253_p7, %p252_p6 }
  0x16   :  { %189 = vmatprep.subr.mxu0 %v68_v7 }
  0x17   :  { %190 = vmatpush3.msra.mxu0 %v68_v7  ;;  %p255_p9 = pnand %p254_p8, %p248_p5 }
  0x18   :  { %191 = vmatprep.subr.mxu0 %v67_v8 }
  0x19   :  { %192 = vmatpush3.msra.mxu0 %v67_v8 }
  0x1a   :  { %193 = vmatprep.subr.mxu0 %v66_v9 }
  0x1b   :  { %194 = vmatpush3.msra.mxu0 %v66_v9 }
  0x1c   :  { %195 = vmatprep.subr.mxu0 %v65_v10 }
  0x1d   :  { %196 = vmatpush3.msra.mxu0 %v65_v10 }
  0x1e   :  { %197 = vmatprep.subr.mxu0 %v64_v11 }
  0x1f   :  { %198 = vmatpush3.msra.mxu0 %v64_v11 }
  0x20   :  { %199 = vmatprep.subr.mxu0 %v63_v12 }
  0x21   :  { %200 = vmatpush3.msra.mxu0 %v63_v12 }
  0x22   :  { %201 = vmatprep.subr.mxu0 %v62_v13 }
  0x23   :  { %202 = vmatpush3.msra.mxu0 %v62_v13 }
  0x24   :  { %203 = vmatprep.subr.mxu0 %v61_v14 }
  0x25   :  { %204 = vmatpush3.msra.mxu0 %v61_v14 }
  0x26   :  { %205 = vmatprep.subr.mxu0 %v60_v15 }
  0x27   :  { %206 = vmatpush3.msra.mxu0 %v60_v15 }
  0x28   :  { %207 = vmatprep.subr.mxu0 %v59_v16 }
  0x29   :  { %208 = vmatpush3.msra.mxu0 %v59_v16 }
  0x2a   :  { %209 = vmatprep.subr.mxu0 %v58_v17 }
  0x2b   :  { %210 = vmatpush3.msra.mxu0 %v58_v17 }
  0x2c   :  { %211 = vmatprep.subr.mxu0 %v57_v18 }
  0x2d   :  { %212 = vmatpush3.msra.mxu0 %v57_v18 }
  0x2e   :  { %213 = vmatprep.subr.mxu0 %v56_v19 }
  0x2f   :  { %214 = vmatpush3.msra.mxu0 %v56_v19 }
  0x30   :  { %215 = vmatprep.subr.mxu0 %v55_v20 }
  0x31   :  { %216 = vmatpush3.msra.mxu0 %v55_v20 }
  0x8b   :  { %v46_v23 = vpop.permute.xlu1 %45  ;;  %v35_v24 = vpop.permute.xlu0 %34 }
  0x8c   :  { %vm39_vm0 = vcmp.eq.s32.totalorder %v32_v22, %v35_v24 }
  0x8d   :  { %217 = vmatprep.mubr.msk.f32.mxu0 %vm39_vm0, %v46_v23 }
  0x8f   :  { %v51_v25 = vpop.permute.xlu1 %50  ;;  %v38_v26 = vpop.permute.xlu0 %37 }
  0x90   :  { %vm40_vm1 = vcmp.eq.s32.totalorder %v32_v22, %v38_v26 }
  0x91   :  { %218 = vmatmul.mubr.msk.f32.vlgmr.msra.gmra.mxu0 %vm40_vm1, %v51_v25 }
 0x151   :  { %v219_v27 = vpop.f32.mrf.mxu0 }
 0x152   :  { %147 = vst [vmem:[#allocation5 + $0x8] sm:$0xff] %v219_v27 }
 0x153   :  { %v137_v28 = vpop.f32.mrf.mxu0 }
 0x154   :  { %146 = vst [vmem:[#allocation5] sm:$0xff] %v137_v28 }
 0x155   :  { %258 = shalt.err (!%p255_p9)
}
 0x156   :  { %159 = dma.vmem_to_hbm [thread:$0]  %s154_s1, 256, %s323_s3, [#allocation4], %s272_s15, %s272_s15, %s273_s16  }
 0x157   :  { %269 = dma.done.wait [#allocation4], 256  }
 0x158   :  { %270 = vsyncadd [#allocation4], 4294967040 }
 0x159   :  { %163 = vsyncpa [#allocation3], 1 }
 0x15a   :  { %164 = vsyncpa [#allocation4], 1 }

// kernel: tpu_custom_call.1
= control target key start
LH: loop header
LB: loop body
LE: loop exit
PB: predicated region body
PF: predicated region fallthrough
CT: control target
= control target key end

     0   :  { %8 = vsyncpa [#allocation3], 0  ;;  %s320_s0 = inlined_call_operand.vmem [shape: s32[16,1], index: 0, kind: input, shape index: {}]   ;;  %s321_s1 = inlined_call_operand.vmem [shape: f32[16,1], index: 1, kind: input, shape index: {}]   ;;  %s322_s2 = inlined_call_operand.hbm [shape: f32[128,128], index: 2, kind: input, shape index: {}]   ;;  %s323_s3 = inlined_call_operand.hbm [shape: f32[16,128], index: 3, kind: output, shape index: {}]  }
   0x1   :  { %9 = vsyncpa [#allocation4], 0  ;;  %s271_s12 = smov [#allocation2]  }
   0x2   :  { %s19_s13 = sshll.u32 %s271_s12, 4  ;;  %s20_s13 = int_to_ptr.vmem [resolvable:$true] %s19_s13 }
   0x3   :  { %s235_s14 = scalar_lea.vmem %s20_s13, 2048  ;;  %p240_p1 = scmp.lt.s32.totalorder %s20_s13, %s20_s13 }
   0x4   :  { %p236_p0 = scmp.ne.s32.totalorder %s20_s13, %s235_s14  ;;  %p241_p2 = scmp.lt.s32.totalorder %s235_s14, %s235_s14 }
   0x6   :  { %p242_p3 = por %p241_p2, %p240_p1 }
   0x8   :  { %p243_p4 = pnand %p242_p3, %p236_p0 }
   0xa   :  { %246 = shalt.err (!%p243_p4)
}
   0xb   :  { %s272_s15 = smov 128   ;;  %s273_s16 = smov 8  }
   0xc   :  { %25 = dma.hbm_to_vmem [thread:$0]  %s322_s2, 2048, %s20_s13, [#allocation3], %s272_s15, %s272_s15, %s273_s16  }
   0xd   :  { %267 = dma.done.wait [#allocation3], 2048  }
   0xe   :  { %268 = vsyncadd [#allocation3], 4294965248  ;;  %v274_v0 = vmov 0   ;;  %v41_v1 = vld [vmem:[%s321_s1] sm:$0xff]  ;;  %v70_v3 = vld [vmem:[#allocation2 + $0x78] sm:$0xff]  ;;  %v31_v21 = vlaneseq }
   0xf   :  { %226 = vset.pattern.permute.xlu1 %v274_v0  ;;  %225 = vset.pattern.permute.xlu0 %v274_v0  ;;  %v29_v2 = vld [vmem:[%s320_s0] sm:$0xff]  ;;  %v69_v4 = vld [vmem:[#allocation2 + $0x70] sm:$0xff]  ;;  %v42_v5 = vld [vmem:[%s321_s1 + $0x8] sm:$0xff] }
  0x10   :  { %45 = vperm.xlu1 %226, %v41_v1   ;;  %34 = vperm.xlu0 %225, %v29_v2   ;;  %v30_v6 = vld [vmem:[%s320_s0 + $0x8] sm:$0xff]  ;;  %v67_v8 = vld [vmem:[#allocation2 + $0x60] sm:$0xff]  ;;  %v66_v9 = vld [vmem:[#allocation2 + $0x58] sm:$0xff]  ;;  %v32_v22 = vand.u32 127, %v31_v21  ;;  %s275_s0 = smov [#allocation5]  }
  0x11   :  { %185 = vmatprep.subr.mxu0 %v70_v3  ;;  %v68_v7 = vld [vmem:[#allocation2 + $0x68] sm:$0xff]  ;;  %v65_v10 = vld [vmem:[#allocation2 + $0x50] sm:$0xff]  ;;  %v63_v12 = vld [vmem:[#allocation2 + $0x40] sm:$0xff]  ;;  %s153_s1 = sshll.u32 %s275_s0, 4  ;;  %s154_s1 = int_to_ptr.vmem [resolvable:$true] %s153_s1 }
  0x12   :  { %186 = vmatpush3.msra.mxu0 %v70_v3  ;;  %v64_v11 = vld [vmem:[#allocation2 + $0x48] sm:$0xff]  ;;  %v62_v13 = vld [vmem:[#allocation2 + $0x38] sm:$0xff]  ;;  %v61_v14 = vld [vmem:[#allocation2 + $0x30] sm:$0xff]  ;;  %s247_s26 = scalar_lea.vmem %s154_s1, 256  ;;  %p252_p6 = scmp.lt.s32.totalorder %s154_s1, %s154_s1 }
  0x13   :  { %187 = vmatprep.subr.mxu0 %v69_v4  ;;  %v60_v15 = vld [vmem:[#allocation2 + $0x28] sm:$0xff]  ;;  %v59_v16 = vld [vmem:[#allocation2 + $0x20] sm:$0xff]  ;;  %v58_v17 = vld [vmem:[#allocation2 + $0x18] sm:$0xff]  ;;  %p248_p5 = scmp.ne.s32.totalorder %s154_s1, %s247_s26  ;;  %p253_p7 = scmp.lt.s32.totalorder %s247_s26, %s247_s26 }
  0x14   :  { %50 = vperm.xlu1 %226, %v42_v5   ;;  %37 = vperm.xlu0 %225, %v30_v6   ;;  %v57_v18 = vld [vmem:[#allocation2 + $0x10] sm:$0xff]  ;;  %v56_v19 = vld [vmem:[#allocation2 + $0x8] sm:$0xff]  ;;  %v55_v20 = vld [vmem:[#allocation2] sm:$0xff] }
  0x15   :  { %188 = vmatpush3.msra.mxu0 %v69_v4  ;;  %p254_p8 = por %p253_p7, %p252_p6 }
  0x16   :  { %189 = vmatprep.subr.mxu0 %v68_v7 }
  0x17   :  { %190 = vmatpush3.msra.mxu0 %v68_v7  ;;  %p255_p9 = pnand %p254_p8, %p248_p5 }
  0x18   :  { %191 = vmatprep.subr.mxu0 %v67_v8 }
  0x19   :  { %192 = vmatpush3.msra.mxu0 %v67_v8 }
  0x1a   :  { %193 = vmatprep.subr.mxu0 %v66_v9 }
  0x1b   :  { %194 = vmatpush3.msra.mxu0 %v66_v9 }
  0x1c   :  { %195 = vmatprep.subr.mxu0 %v65_v10 }
  0x1d   :  { %196 = vmatpush3.msra.mxu0 %v65_v10 }
  0x1e   :  { %197 = vmatprep.subr.mxu0 %v64_v11 }
  0x1f   :  { %198 = vmatpush3.msra.mxu0 %v64_v11 }
  0x20   :  { %199 = vmatprep.subr.mxu0 %v63_v12 }
  0x21   :  { %200 = vmatpush3.msra.mxu0 %v63_v12 }
  0x22   :  { %201 = vmatprep.subr.mxu0 %v62_v13 }
  0x23   :  { %202 = vmatpush3.msra.mxu0 %v62_v13 }
  0x24   :  { %203 = vmatprep.subr.mxu0 %v61_v14 }
  0x25   :  { %204 = vmatpush3.msra.mxu0 %v61_v14 }
  0x26   :  { %205 = vmatprep.subr.mxu0 %v60_v15 }
  0x27   :  { %206 = vmatpush3.msra.mxu0 %v60_v15 }
  0x28   :  { %207 = vmatprep.subr.mxu0 %v59_v16 }
  0x29   :  { %208 = vmatpush3.msra.mxu0 %v59_v16 }
  0x2a   :  { %209 = vmatprep.subr.mxu0 %v58_v17 }
  0x2b   :  { %210 = vmatpush3.msra.mxu0 %v58_v17 }
  0x2c   :  { %211 = vmatprep.subr.mxu0 %v57_v18 }
  0x2d   :  { %212 = vmatpush3.msra.mxu0 %v57_v18 }
  0x2e   :  { %213 = vmatprep.subr.mxu0 %v56_v19 }
  0x2f   :  { %214 = vmatpush3.msra.mxu0 %v56_v19 }
  0x30   :  { %215 = vmatprep.subr.mxu0 %v55_v20 }
  0x31   :  { %216 = vmatpush3.msra.mxu0 %v55_v20 }
  0x8b   :  { %v46_v23 = vpop.permute.xlu1 %45  ;;  %v35_v24 = vpop.permute.xlu0 %34 }
  0x8c   :  { %vm39_vm0 = vcmp.eq.s32.totalorder %v32_v22, %v35_v24 }
  0x8d   :  { %217 = vmatprep.mubr.msk.f32.mxu0 %vm39_vm0, %v46_v23 }
  0x8f   :  { %v51_v25 = vpop.permute.xlu1 %50  ;;  %v38_v26 = vpop.permute.xlu0 %37 }
  0x90   :  { %vm40_vm1 = vcmp.eq.s32.totalorder %v32_v22, %v38_v26 }
  0x91   :  { %218 = vmatmul.mubr.msk.f32.vlgmr.msra.gmra.mxu0 %vm40_vm1, %v51_v25 }
 0x151   :  { %v219_v27 = vpop.f32.mrf.mxu0 }
 0x152   :  { %147 = vst [vmem:[#allocation5 + $0x8] sm:$0xff] %v219_v27 }
 0x153   :  { %v137_v28 = vpop.f32.mrf.mxu0 }
 0x154   :  { %146 = vst [vmem:[#allocation5] sm:$0xff] %v137_v28 }
 0x155   :  { %258 = shalt.err (!%p255_p9)
}
 0x156   :  { %159 = dma.vmem_to_hbm [thread:$0]  %s154_s1, 256, %s323_s3, [#allocation4], %s272_s15, %s272_s15, %s273_s16  }
 0x157   :  { %269 = dma.done.wait [#allocation4], 256  }
 0x158   :  { %270 = vsyncadd [#allocation4], 4294967040 }
 0x159   :  { %163 = vsyncpa [#allocation3], 1 }
 0x15a   :  { %164 = vsyncpa [#allocation4], 1 }

</bundles_post_ra>
